<compile_context>
chip_gen: v5e
topology: v5e:2x2
jax: 0.10.0
libtpu: 0.0.40
codegen_flags: <defaults>
</compile_context>

<pallas_src>
import numpy as np

import jax
import jax.numpy as jnp
from jax.experimental import pallas as pl
from jax.experimental.pallas import tpu as pltpu


# 3x3 stencil offsets (dh, dw), row-major; k = (dh+1)*3 + (dw+1). The SAME order
# is used for the im2col weight columns, the lane-roll shifts and the masks.
OFFSETS = tuple((dh, dw) for dh in (-1, 0, 1) for dw in (-1, 0, 1))
CENTER = 4  # offset (0, 0): zero shift, all-ones boundary mask (both skipped)


def _interp_matrix(in_size, out_core, out_full, pad_before):
    """Bilinear align_corners=True interpolation matrix with F.pad folded in.

    Rows: positions in the padded output grid (out_full). Cols: input positions.
    Rows outside [pad_before, pad_before + out_core) stay zero == zero padding.
    """
    A = np.zeros((out_full, in_size), dtype=np.float32)
    scale = (in_size - 1) / (out_core - 1) if out_core > 1 else 0.0
    for i in range(out_core):
        src = i * scale
        lo = min(int(np.floor(src)), in_size - 1)
        hi = min(lo + 1, in_size - 1)
        f = src - lo
        A[pad_before + i, lo] += 1.0 - f
        A[pad_before + i, hi] += f
    return A


def _shift_masks(H, W):
    """(9, H*W) 0/1 masks: is the (dh, dw)-shifted neighbour in bounds?"""
    hh, ww = np.meshgrid(np.arange(H), np.arange(W), indexing="ij")
    rows = []
    for dh, dw in OFFSETS:
        ok = (hh + dh >= 0) & (hh + dh < H) & (ww + dw >= 0) & (ww + dw < W)
        rows.append(ok.reshape(-1).astype(np.float32))
    return np.stack(rows)


def up_forward(x1, x2, params):
    """Inference forward of Up(in_channels=C1+C2, out_channels, bilinear_upsample=True)."""
    N, C1, H1, W1 = x1.shape
    N2, C2, H2, W2 = x2.shape
    assert N == N2
    w1, w2 = params["w1"], params["w2"]
    Cmid, Cin = w1.shape[0], w1.shape[1]
    Cout = w2.shape[0]
    assert Cin == C1 + C2, "conv1 consumes cat([x2, up(x1)], dim=1)"
    HW1, HW2 = H1 * W1, H2 * W2
    eps = 1e-5
    f32 = jnp.float32
    HIGH = jax.lax.Precision.HIGHEST

    # ---- fold eval-mode BatchNorm into the bias-free convs ----
    s1 = params["bn1_gamma"] * jax.lax.rsqrt(params["bn1_var"] + eps)
    w1_eff = w1 * s1[:, None, None, None]
    b1_eff = params["bn1_beta"] - params["bn1_mean"] * s1
    s2 = params["bn2_gamma"] * jax.lax.rsqrt(params["bn2_var"] + eps)
    w2_eff = w2 * s2[:, None, None, None]
    b2_eff = params["bn2_beta"] - params["bn2_mean"] * s2

    # ---- im2col weight matrices (2-D, lane-dense), bias folded as last column ----
    # column index = k*Cin + c with k = (dh+1)*3 + (dw+1) == patch-slab row order.
    w1_mat = jnp.transpose(w1_eff, (0, 2, 3, 1)).reshape(Cmid, 9 * Cin)
    w1_aug = jnp.concatenate([w1_mat, b1_eff[:, None]], axis=1).astype(f32)  # (Cmid, 9*Cin+1)
    w2_mat = jnp.transpose(w2_eff, (0, 2, 3, 1)).reshape(Cout, 9 * Cmid)
    w2_aug = jnp.concatenate([w2_mat, b2_eff[:, None]], axis=1).astype(f32)  # (Cout, 9*Cmid+1)

    # ---- static tables: fused (bilinear 2x + F.pad) map and 3x3 boundary masks ----
    diffY, diffX = H2 - 2 * H1, W2 - 2 * W1
    assert diffY >= 0 and diffX >= 0, "x2 must be at least as large as 2x-upsampled x1"
    A_h = _interp_matrix(H1, 2 * H1, H2, diffY // 2)
    A_w = _interp_matrix(W1, 2 * W1, W2, diffX // 2)
    up_t = jnp.asarray(np.kron(A_h, A_w).T)        # (HW1, HW2); TODO(synk): separable at scale
    masks = jnp.asarray(_shift_masks(H2, W2))      # (9, HW2), lane-dense

    # channel-major, lane-dense flattening -- free reshapes, NO transposes
    x1f = x1.reshape(N, C1, HW1)
    x2f = x2.reshape(N, C2, HW2)

    def kernel(x1_ref, x2_ref, up_ref, w1_ref, w2_ref, mask_ref, o_ref):
        x1v = x1_ref[0].astype(f32)                 # (C1, HW1)
        x2v = x2_ref[0].astype(f32)                 # (C2, HW2)

        # -- bilinear 2x upsample + F.pad: ONE MXU contraction over K = HW1 --
        x1u = jnp.dot(x1v, up_ref[...], preferred_element_type=f32,
                      precision=HIGH)               # (C1, HW2)

        # concat([x2, up(x1)]) once; roll the concatenated slab once per offset
        cat = jnp.concatenate([x2v, x1u], axis=0)   # (Cin, HW2)

        def im2col(x):
            # (9*C + 1, HW2) patch slab (last row = ones for the folded bias),
            # built as a value so it stays in vregs (no scratch VMEM store).
            rows = []
            for k, (dh, dw) in enumerate(OFFSETS):
                sh = (-(dh * W2 + dw)) % HW2
                r = x if sh == 0 else pltpu.roll(x, sh, axis=1)
                if k != CENTER:                     # centre tap mask is all-ones
                    r = r * mask_ref[k:k + 1, :]
                rows.append(r)
            rows.append(jnp.ones((1, HW2), f32))
            return jnp.concatenate(rows, axis=0)

        # -- conv1 (3x3, pad=1, BN+bias folded) + ReLU: one MXU dot, K = 9*Cin+1 --
        mid = jnp.maximum(
            jnp.dot(w1_ref[...], im2col(cat),
                    preferred_element_type=f32, precision=HIGH), 0.0)   # (Cmid, HW2)

        # -- conv2 (3x3, pad=1, BN+bias folded) + ReLU: one MXU dot, K = 9*Cmid+1 --
        out = jnp.maximum(
            jnp.dot(w2_ref[...], im2col(mid),
                    preferred_element_type=f32, precision=HIGH), 0.0)   # (Cout, HW2)

        # Dropout2d(0.1) is identity at inference.
        o_ref[0] = out.astype(o_ref.dtype)

    flops = 2 * N * HW2 * (C1 * HW1 + Cmid * (9 * Cin + 1) + Cout * (9 * Cmid + 1))
    bytes_accessed = 4 * (x1f.size + x2f.size + up_t.size + masks.size
                          + w1_aug.size + w2_aug.size + N * Cout * HW2)

    out_flat = pl.pallas_call(
        kernel,
        out_shape=jax.ShapeDtypeStruct((N, Cout, HW2), x2.dtype),
        grid_spec=pltpu.PrefetchScalarGridSpec(
            num_scalar_prefetch=0,
            grid=(N,),                              # >=2 steps -> both v7x TCs busy
            in_specs=[
                pl.BlockSpec((1, C1, HW1), lambda n: (n, 0, 0)),
                pl.BlockSpec((1, C2, HW2), lambda n: (n, 0, 0)),
                # weights / tables: constant index_map -> stay resident in VMEM
                pl.BlockSpec((HW1, HW2), lambda n: (0, 0)),
                pl.BlockSpec((Cmid, 9 * Cin + 1), lambda n: (0, 0)),
                pl.BlockSpec((Cout, 9 * Cmid + 1), lambda n: (0, 0)),
                pl.BlockSpec((9, HW2), lambda n: (0, 0)),
            ],
            # lane-dense output: last dim = H2*W2 (multiple of 128 here)
            out_specs=pl.BlockSpec((1, Cout, HW2), lambda n: (n, 0, 0)),
        ),
        compiler_params=pltpu.CompilerParams(
            dimension_semantics=("parallel",)),
        cost_estimate=pl.CostEstimate(flops=flops, transcendentals=0,
                                      bytes_accessed=bytes_accessed),
    )(x1f, x2f, up_t, w1_aug, w2_aug, masks)

    return out_flat.reshape(N, Cout, H2, W2)   # free reshape back to NCHW


# ----------------------------- pure-JAX reference -----------------------------
def up_reference(x1, x2, params):
    eps = 1e-5
    N, C1, H1, W1 = x1.shape
    _, C2, H2, W2 = x2.shape
    Ho, Wo = 2 * H1, 2 * W1

    hs = jnp.arange(Ho, dtype=jnp.float32) * ((H1 - 1) / (Ho - 1))
    ws = jnp.arange(Wo, dtype=jnp.float32) * ((W1 - 1) / (Wo - 1))
    h0 = jnp.floor(hs).astype(jnp.int32)
    h1i = jnp.minimum(h0 + 1, H1 - 1)
    fh = hs - h0
    w0 = jnp.floor(ws).astype(jnp.int32)
    w1i = jnp.minimum(w0 + 1, W1 - 1)
    fw = ws - w0
    xh0, xh1 = x1[:, :, h0, :], x1[:, :, h1i, :]
    wfh, wfw = fh[None, None, :, None], fw[None, None, None, :]
    up = (xh0[:, :, :, w0] * (1 - wfh) * (1 - wfw)
          + xh0[:, :, :, w1i] * (1 - wfh) * wfw
          + xh1[:, :, :, w0] * wfh * (1 - wfw)
          + xh1[:, :, :, w1i] * wfh * wfw)

    diffY, diffX = H2 - Ho, W2 - Wo
    up = jnp.pad(up, ((0, 0), (0, 0),
                      (diffY // 2, diffY - diffY // 2),
                      (diffX // 2, diffX - diffX // 2)))
    x = jnp.concatenate([x2, up], axis=1)

    def conv_bn_relu(t, w, g, b, m, v):
        y = jax.lax.conv_general_dilated(
            t, w, (1, 1), ((1, 1), (1, 1)),
            dimension_numbers=("NCHW", "OIHW", "NCHW"),
            precision=jax.lax.Precision.HIGHEST)
        y = (y - m[None, :, None, None]) * jax.lax.rsqrt(v + eps)[None, :, None, None]
        y = y * g[None, :, None, None] + b[None, :, None, None]
        return jnp.maximum(y, 0.0)

    y = conv_bn_relu(x, params["w1"], params["bn1_gamma"], params["bn1_beta"],
                     params["bn1_mean"], params["bn1_var"])
    y = conv_bn_relu(y, params["w2"], params["bn2_gamma"], params["bn2_beta"],
                     params["bn2_mean"], params["bn2_var"])
    return y  # Dropout2d is identity in eval mode


if __name__ == "__main__":
    key = jax.random.PRNGKey(0)
    ks = jax.random.split(key, 12)

    # Up(in_channels=4, out_channels=4, bilinear_upsample=True):
    #   x1: decoder feature (2 ch, 8x8), x2: skip feature (2 ch, 16x16)
    N, C1, H1, W1 = 2, 2, 8, 8
    C2, H2, W2 = 2, 16, 16
    Cin = C1 + C2
    Cmid = Cin // 2
    Cout = 4

    x1 = jax.random.normal(ks[0], (N, C1, H1, W1), jnp.float32)
    x2 = jax.random.normal(ks[1], (N, C2, H2, W2), jnp.float32)
    params = dict(
        w1=0.2 * jax.random.normal(ks[2], (Cmid, Cin, 3, 3), jnp.float32),
        bn1_gamma=1.0 + 0.1 * jax.random.normal(ks[3], (Cmid,), jnp.float32),
        bn1_beta=0.1 * jax.random.normal(ks[4], (Cmid,), jnp.float32),
        bn1_mean=0.1 * jax.random.normal(ks[5], (Cmid,), jnp.float32),
        bn1_var=jax.random.uniform(ks[6], (Cmid,), jnp.float32, 0.5, 1.5),
        w2=0.2 * jax.random.normal(ks[7], (Cout, Cmid, 3, 3), jnp.float32),
        bn2_gamma=1.0 + 0.1 * jax.random.normal(ks[8], (Cout,), jnp.float32),
        bn2_beta=0.1 * jax.random.normal(ks[9], (Cout,), jnp.float32),
        bn2_mean=0.1 * jax.random.normal(ks[10], (Cout,), jnp.float32),
        bn2_var=jax.random.uniform(ks[11], (Cout,), jnp.float32, 0.5, 1.5),
    )

    out = jax.jit(up_forward)(x1, x2, params)
    jax.block_until_ready(out)

    ref = up_reference(x1, x2, params)
    assert out.shape == (N, Cout, H2, W2)
    err = float(jnp.max(jnp.abs(out - ref)))
    assert err < 5e-4, f"max abs err {err}"

    print("KERNEL_OK")
</pallas_src>

<mosaic_0001>
module attributes {stable_mosaic.version = 11 : i64} {
  func.func @kernel(%arg0: i32, %arg1: memref<1x2x64xf32, #tpu.memory_space<vmem>>, %arg2: memref<1x2x256xf32, #tpu.memory_space<vmem>>, %arg3: memref<64x256xf32, #tpu.memory_space<vmem>>, %arg4: memref<2x37xf32, #tpu.memory_space<vmem>>, %arg5: memref<4x19xf32, #tpu.memory_space<vmem>>, %arg6: memref<9x256xf32, #tpu.memory_space<vmem>>, %arg7: memref<1x4x256xf32, #tpu.memory_space<vmem>>) attributes {dimension_semantics = [#tpu.dimension_semantics<parallel>], iteration_bounds = array<i64: 2>, scalar_prefetch = 0 : i64, scratch_operands = 0 : i64, tpu.core_type = #tpu.core_type<tc>, window_params = [{transform_indices = @transform_0, window_bounds = array<i64: 1, 2, 64>}, {transform_indices = @transform_1, window_bounds = array<i64: 1, 2, 256>}, {pipeline_mode = #tpu.pipeline_mode<synchronous>, transform_indices = @transform_2, window_bounds = array<i64: 64, 256>}, {pipeline_mode = #tpu.pipeline_mode<synchronous>, transform_indices = @transform_3, window_bounds = array<i64: 2, 37>}, {pipeline_mode = #tpu.pipeline_mode<synchronous>, transform_indices = @transform_4, window_bounds = array<i64: 4, 19>}, {pipeline_mode = #tpu.pipeline_mode<synchronous>, transform_indices = @transform_5, window_bounds = array<i64: 9, 256>}, {transform_indices = @transform_6, window_bounds = array<i64: 1, 4, 256>}]} {
    %c0 = arith.constant 0 : index
    %c0_0 = arith.constant 0 : index
    %c0_1 = arith.constant 0 : index
    %0 = vector.load %arg1[%c0, %c0_0, %c0_1] : memref<1x2x64xf32, #tpu.memory_space<vmem>>, vector<1x2x64xf32>
    %1 = vector.shape_cast %0 : vector<1x2x64xf32> to vector<2x64xf32>
    %c0_2 = arith.constant 0 : index
    %c0_3 = arith.constant 0 : index
    %c0_4 = arith.constant 0 : index
    %2 = vector.load %arg2[%c0_2, %c0_3, %c0_4] : memref<1x2x256xf32, #tpu.memory_space<vmem>>, vector<1x2x256xf32>
    %3 = vector.shape_cast %2 : vector<1x2x256xf32> to vector<2x256xf32>
    %c0_5 = arith.constant 0 : index
    %c0_6 = arith.constant 0 : index
    %4 = vector.load %arg3[%c0_5, %c0_6] : memref<64x256xf32, #tpu.memory_space<vmem>>, vector<64x256xf32>
    %cst = arith.constant dense<0.000000e+00> : vector<2x256xf32>
    %5 = tpu.matmul %1, %4, %cst {dimension_numbers = #tpu.dot_dimension_numbers<[1], [0], [0], [1], [0, 0, 1, 1], [], []>, precision = #tpu.contract_precision<fp32>} : vector<2x64xf32>, vector<64x256xf32>, vector<2x256xf32> -> vector<2x256xf32>
    %6 = tpu.concatenate %3, %5 in 0 : vector<2x256xf32>, vector<2x256xf32> -> vector<4x256xf32>
    %c0_7 = arith.constant 0 : index
    %c0_8 = arith.constant 0 : index
    %7 = vector.load %arg4[%c0_7, %c0_8] : memref<2x37xf32, #tpu.memory_space<vmem>>, vector<2x37xf32>
    %c17_i32 = arith.constant 17 : i32
    %8 = tpu.dynamic_rotate %6 by %c17_i32 dim 1 : vector<4x256xf32>, i32 -> vector<4x256xf32>
    %c0_9 = arith.constant 0 : index
    %c0_10 = arith.constant 0 : index
    %9 = vector.load %arg6[%c0_9, %c0_10] : memref<9x256xf32, #tpu.memory_space<vmem>>, vector<1x256xf32>
    %10 = vector.broadcast %9 : vector<1x256xf32> to vector<4x256xf32>
    %11 = arith.mulf %8, %10 : vector<4x256xf32>
    %c16_i32 = arith.constant 16 : i32
    %12 = tpu.dynamic_rotate %6 by %c16_i32 dim 1 : vector<4x256xf32>, i32 -> vector<4x256xf32>
    %c1 = arith.constant 1 : index
    %c0_11 = arith.constant 0 : index
    %13 = vector.load %arg6[%c1, %c0_11] : memref<9x256xf32, #tpu.memory_space<vmem>>, vector<1x256xf32>
    %14 = vector.broadcast %13 : vector<1x256xf32> to vector<4x256xf32>
    %15 = arith.mulf %12, %14 : vector<4x256xf32>
    %c15_i32 = arith.constant 15 : i32
    %16 = tpu.dynamic_rotate %6 by %c15_i32 dim 1 : vector<4x256xf32>, i32 -> vector<4x256xf32>
    %c2 = arith.constant 2 : index
    %c0_12 = arith.constant 0 : index
    %17 = vector.load %arg6[%c2, %c0_12] : memref<9x256xf32, #tpu.memory_space<vmem>>, vector<1x256xf32>
    %18 = vector.broadcast %17 : vector<1x256xf32> to vector<4x256xf32>
    %19 = arith.mulf %16, %18 : vector<4x256xf32>
    %c1_i32 = arith.constant 1 : i32
    %20 = tpu.dynamic_rotate %6 by %c1_i32 dim 1 : vector<4x256xf32>, i32 -> vector<4x256xf32>
    %c3 = arith.constant 3 : index
    %c0_13 = arith.constant 0 : index
    %21 = vector.load %arg6[%c3, %c0_13] : memref<9x256xf32, #tpu.memory_space<vmem>>, vector<1x256xf32>
    %22 = vector.broadcast %21 : vector<1x256xf32> to vector<4x256xf32>
    %23 = arith.mulf %20, %22 : vector<4x256xf32>
    %c255_i32 = arith.constant 255 : i32
    %24 = tpu.dynamic_rotate %6 by %c255_i32 dim 1 : vector<4x256xf32>, i32 -> vector<4x256xf32>
    %c5 = arith.constant 5 : index
    %c0_14 = arith.constant 0 : index
    %25 = vector.load %arg6[%c5, %c0_14] : memref<9x256xf32, #tpu.memory_space<vmem>>, vector<1x256xf32>
    %26 = vector.broadcast %25 : vector<1x256xf32> to vector<4x256xf32>
    %27 = arith.mulf %24, %26 : vector<4x256xf32>
    %c241_i32 = arith.constant 241 : i32
    %28 = tpu.dynamic_rotate %6 by %c241_i32 dim 1 : vector<4x256xf32>, i32 -> vector<4x256xf32>
    %c6 = arith.constant 6 : index
    %c0_15 = arith.constant 0 : index
    %29 = vector.load %arg6[%c6, %c0_15] : memref<9x256xf32, #tpu.memory_space<vmem>>, vector<1x256xf32>
    %30 = vector.broadcast %29 : vector<1x256xf32> to vector<4x256xf32>
    %31 = arith.mulf %28, %30 : vector<4x256xf32>
    %c240_i32 = arith.constant 240 : i32
    %32 = tpu.dynamic_rotate %6 by %c240_i32 dim 1 : vector<4x256xf32>, i32 -> vector<4x256xf32>
    %c7 = arith.constant 7 : index
    %c0_16 = arith.constant 0 : index
    %33 = vector.load %arg6[%c7, %c0_16] : memref<9x256xf32, #tpu.memory_space<vmem>>, vector<1x256xf32>
    %34 = vector.broadcast %33 : vector<1x256xf32> to vector<4x256xf32>
    %35 = arith.mulf %32, %34 : vector<4x256xf32>
    %c239_i32 = arith.constant 239 : i32
    %36 = tpu.dynamic_rotate %6 by %c239_i32 dim 1 : vector<4x256xf32>, i32 -> vector<4x256xf32>
    %c8 = arith.constant 8 : index
    %c0_17 = arith.constant 0 : index
    %37 = vector.load %arg6[%c8, %c0_17] : memref<9x256xf32, #tpu.memory_space<vmem>>, vector<1x256xf32>
    %38 = vector.broadcast %37 : vector<1x256xf32> to vector<4x256xf32>
    %39 = arith.mulf %36, %38 : vector<4x256xf32>
    %cst_18 = arith.constant 1.000000e+00 : f32
    %40 = vector.broadcast %cst_18 : f32 to vector<1x256xf32>
    %41 = tpu.concatenate %11, %15, %19, %23, %6, %27, %31, %35, %39, %40 in 0 : vector<4x256xf32>, vector<4x256xf32>, vector<4x256xf32>, vector<4x256xf32>, vector<4x256xf32>, vector<4x256xf32>, vector<4x256xf32>, vector<4x256xf32>, vector<4x256xf32>, vector<1x256xf32> -> vector<37x256xf32>
    %cst_19 = arith.constant dense<0.000000e+00> : vector<2x256xf32>
    %42 = tpu.matmul %7, %41, %cst_19 {dimension_numbers = #tpu.dot_dimension_numbers<[1], [0], [0], [1], [0, 0, 1, 1], [], []>, precision = #tpu.contract_precision<fp32>} : vector<2x37xf32>, vector<37x256xf32>, vector<2x256xf32> -> vector<2x256xf32>
    %cst_20 = arith.constant 0.000000e+00 : f32
    %43 = vector.broadcast %cst_20 : f32 to vector<2x256xf32>
    %44 = arith.maximumf %42, %43 : vector<2x256xf32>
    %c0_21 = arith.constant 0 : index
    %c0_22 = arith.constant 0 : index
    %45 = vector.load %arg5[%c0_21, %c0_22] : memref<4x19xf32, #tpu.memory_space<vmem>>, vector<4x19xf32>
    %c17_i32_23 = arith.constant 17 : i32
    %46 = tpu.dynamic_rotate %44 by %c17_i32_23 dim 1 : vector<2x256xf32>, i32 -> vector<2x256xf32>
    %c0_24 = arith.constant 0 : index
    %c0_25 = arith.constant 0 : index
    %47 = vector.load %arg6[%c0_24, %c0_25] : memref<9x256xf32, #tpu.memory_space<vmem>>, vector<1x256xf32>
    %48 = vector.broadcast %47 : vector<1x256xf32> to vector<2x256xf32>
    %49 = arith.mulf %46, %48 : vector<2x256xf32>
    %c16_i32_26 = arith.constant 16 : i32
    %50 = tpu.dynamic_rotate %44 by %c16_i32_26 dim 1 : vector<2x256xf32>, i32 -> vector<2x256xf32>
    %c1_27 = arith.constant 1 : index
    %c0_28 = arith.constant 0 : index
    %51 = vector.load %arg6[%c1_27, %c0_28] : memref<9x256xf32, #tpu.memory_space<vmem>>, vector<1x256xf32>
    %52 = vector.broadcast %51 : vector<1x256xf32> to vector<2x256xf32>
    %53 = arith.mulf %50, %52 : vector<2x256xf32>
    %c15_i32_29 = arith.constant 15 : i32
    %54 = tpu.dynamic_rotate %44 by %c15_i32_29 dim 1 : vector<2x256xf32>, i32 -> vector<2x256xf32>
    %c2_30 = arith.constant 2 : index
    %c0_31 = arith.constant 0 : index
    %55 = vector.load %arg6[%c2_30, %c0_31] : memref<9x256xf32, #tpu.memory_space<vmem>>, vector<1x256xf32>
    %56 = vector.broadcast %55 : vector<1x256xf32> to vector<2x256xf32>
    %57 = arith.mulf %54, %56 : vector<2x256xf32>
    %c1_i32_32 = arith.constant 1 : i32
    %58 = tpu.dynamic_rotate %44 by %c1_i32_32 dim 1 : vector<2x256xf32>, i32 -> vector<2x256xf32>
    %c3_33 = arith.constant 3 : index
    %c0_34 = arith.constant 0 : index
    %59 = vector.load %arg6[%c3_33, %c0_34] : memref<9x256xf32, #tpu.memory_space<vmem>>, vector<1x256xf32>
    %60 = vector.broadcast %59 : vector<1x256xf32> to vector<2x256xf32>
    %61 = arith.mulf %58, %60 : vector<2x256xf32>
    %c255_i32_35 = arith.constant 255 : i32
    %62 = tpu.dynamic_rotate %44 by %c255_i32_35 dim 1 : vector<2x256xf32>, i32 -> vector<2x256xf32>
    %c5_36 = arith.constant 5 : index
    %c0_37 = arith.constant 0 : index
    %63 = vector.load %arg6[%c5_36, %c0_37] : memref<9x256xf32, #tpu.memory_space<vmem>>, vector<1x256xf32>
    %64 = vector.broadcast %63 : vector<1x256xf32> to vector<2x256xf32>
    %65 = arith.mulf %62, %64 : vector<2x256xf32>
    %c241_i32_38 = arith.constant 241 : i32
    %66 = tpu.dynamic_rotate %44 by %c241_i32_38 dim 1 : vector<2x256xf32>, i32 -> vector<2x256xf32>
    %c6_39 = arith.constant 6 : index
    %c0_40 = arith.constant 0 : index
    %67 = vector.load %arg6[%c6_39, %c0_40] : memref<9x256xf32, #tpu.memory_space<vmem>>, vector<1x256xf32>
    %68 = vector.broadcast %67 : vector<1x256xf32> to vector<2x256xf32>
    %69 = arith.mulf %66, %68 : vector<2x256xf32>
    %c240_i32_41 = arith.constant 240 : i32
    %70 = tpu.dynamic_rotate %44 by %c240_i32_41 dim 1 : vector<2x256xf32>, i32 -> vector<2x256xf32>
    %c7_42 = arith.constant 7 : index
    %c0_43 = arith.constant 0 : index
    %71 = vector.load %arg6[%c7_42, %c0_43] : memref<9x256xf32, #tpu.memory_space<vmem>>, vector<1x256xf32>
    %72 = vector.broadcast %71 : vector<1x256xf32> to vector<2x256xf32>
    %73 = arith.mulf %70, %72 : vector<2x256xf32>
    %c239_i32_44 = arith.constant 239 : i32
    %74 = tpu.dynamic_rotate %44 by %c239_i32_44 dim 1 : vector<2x256xf32>, i32 -> vector<2x256xf32>
    %c8_45 = arith.constant 8 : index
    %c0_46 = arith.constant 0 : index
    %75 = vector.load %arg6[%c8_45, %c0_46] : memref<9x256xf32, #tpu.memory_space<vmem>>, vector<1x256xf32>
    %76 = vector.broadcast %75 : vector<1x256xf32> to vector<2x256xf32>
    %77 = arith.mulf %74, %76 : vector<2x256xf32>
    %cst_47 = arith.constant 1.000000e+00 : f32
    %78 = vector.broadcast %cst_47 : f32 to vector<1x256xf32>
    %79 = tpu.concatenate %49, %53, %57, %61, %44, %65, %69, %73, %77, %78 in 0 : vector<2x256xf32>, vector<2x256xf32>, vector<2x256xf32>, vector<2x256xf32>, vector<2x256xf32>, vector<2x256xf32>, vector<2x256xf32>, vector<2x256xf32>, vector<2x256xf32>, vector<1x256xf32> -> vector<19x256xf32>
    %cst_48 = arith.constant dense<0.000000e+00> : vector<4x256xf32>
    %80 = tpu.matmul %45, %79, %cst_48 {dimension_numbers = #tpu.dot_dimension_numbers<[1], [0], [0], [1], [0, 0, 1, 1], [], []>, precision = #tpu.contract_precision<fp32>} : vector<4x19xf32>, vector<19x256xf32>, vector<4x256xf32> -> vector<4x256xf32>
    %cst_49 = arith.constant 0.000000e+00 : f32
    %81 = vector.broadcast %cst_49 : f32 to vector<4x256xf32>
    %82 = arith.maximumf %80, %81 : vector<4x256xf32>
    %c0_50 = arith.constant 0 : index
    %c0_51 = arith.constant 0 : index
    %c0_52 = arith.constant 0 : index
    %83 = vector.load %arg7[%c0_50, %c0_51, %c0_52] : memref<1x4x256xf32, #tpu.memory_space<vmem>>, vector<1x4x256xf32>
    %84 = vector.shape_cast %83 : vector<1x4x256xf32> to vector<4x256xf32>
    %85 = vector.shape_cast %82 : vector<4x256xf32> to vector<1x4x256xf32>
    tpu.vector_store %arg7[%c0_50, %c0_51, %c0_52], %85 {strides = array<i32>} : memref<1x4x256xf32, #tpu.memory_space<vmem>>, vector<1x4x256xf32>,
    return
  }
  func.func @transform_0(%arg0: i32) -> (i32, i32, i32) {
    %c0_i32 = arith.constant 0 : i32
    %c0_i32_0 = arith.constant 0 : i32
    %c0_i32_1 = arith.constant 0 : i32
    return %arg0, %c0_i32, %c0_i32_0 : i32, i32, i32
  }
  func.func @transform_1(%arg0: i32) -> (i32, i32, i32) {
    %c0_i32 = arith.constant 0 : i32
    %c0_i32_0 = arith.constant 0 : i32
    %c0_i32_1 = arith.constant 0 : i32
    return %arg0, %c0_i32, %c0_i32_0 : i32, i32, i32
  }
  func.func @transform_2(%arg0: i32) -> (i32, i32) {
    %c0_i32 = arith.constant 0 : i32
    %c0_i32_0 = arith.constant 0 : i32
    %c0_i32_1 = arith.constant 0 : i32
    return %c0_i32, %c0_i32_0 : i32, i32
  }
  func.func @transform_3(%arg0: i32) -> (i32, i32) {
    %c0_i32 = arith.constant 0 : i32
    %c0_i32_0 = arith.constant 0 : i32
    %c0_i32_1 = arith.constant 0 : i32
    return %c0_i32, %c0_i32_0 : i32, i32
  }
  func.func @transform_4(%arg0: i32) -> (i32, i32) {
    %c0_i32 = arith.constant 0 : i32
    %c0_i32_0 = arith.constant 0 : i32
    %c0_i32_1 = arith.constant 0 : i32
    return %c0_i32, %c0_i32_0 : i32, i32
  }
  func.func @transform_5(%arg0: i32) -> (i32, i32) {
    %c0_i32 = arith.constant 0 : i32
    %c0_i32_0 = arith.constant 0 : i32
    %c0_i32_1 = arith.constant 0 : i32
    return %c0_i32, %c0_i32_0 : i32, i32
  }
  func.func @transform_6(%arg0: i32) -> (i32, i32, i32) {
    %c0_i32 = arith.constant 0 : i32
    %c0_i32_0 = arith.constant 0 : i32
    %c0_i32_1 = arith.constant 0 : i32
    return %arg0, %c0_i32, %c0_i32_0 : i32, i32, i32
  }
}

</mosaic_0001>

<bundles_post_ra>
// kernel: up_forward.1
= control target key start
LH: loop header
LB: loop body
LE: loop exit
PB: predicated region body
PF: predicated region fallthrough
CT: control target
= control target key end

     0   :  { %s1988_s21 = smov 0   ;;  %s2835_s0 = inlined_call_operand.vmem [shape: f32[2,2,64], index: 0, kind: input, shape index: {}]   ;;  %s2836_s1 = inlined_call_operand.vmem [shape: f32[2,2,256], index: 1, kind: input, shape index: {}]   ;;  %s2837_s2 = inlined_call_operand.vmem [shape: f32[64,256], index: 2, kind: input, shape index: {}]   ;;  %s2838_s3 = inlined_call_operand.vmem [shape: f32[2,37], index: 3, kind: input, shape index: {}]   ;;  %s2839_s4 = inlined_call_operand.vmem [shape: f32[4,19], index: 4, kind: input, shape index: {}]   ;;  %s2840_s5 = inlined_call_operand.vmem [shape: f32[9,256], index: 5, kind: input, shape index: {}]   ;;  %s2841_s6 = inlined_call_operand.vmem [shape: f32[2,4,256], index: 6, kind: output, shape index: {}]  }
   0x1 LB: > { %s1900_s22 = sadd.s32 4294967295, %s1943_s21   ;;  %p1904_p0 = scmp.ge.s32.totalorder %s1943_s21, 1  ;;  %s1943_s21 = sphi %s1988_s21, %s16_s21  }
   0x2   : > { %p221_p1 = scmp.lt.s32.totalorder %s1943_s21, 3 }
   0x4   : > { %p222_p2 = pnand %p1904_p0, %p221_p1 }
   0x5   : > { %p2005_p3 = scmp.lt.s32.totalorder (!%p222_p2), %s1900_s22, 1  ;;  %s1947_s20 = smov (!%p222_p2), 111  }
   0x6   : > { %225 = sbr.rel (%p222_p2) target bundleno = 827 (0x33b), region = 44  ;;  %s1948_s23 = smov (!%p222_p2), 1  }
   0x7   : > { %s1949_s24 = smov (!%p222_p2), 16   ;;  %s1950_s25 = smov (!%p222_p2), 113  }
   0x8   : > { %s1952_s27 = smov (!%p222_p2), 17  }
   0xb   : > { %v285_v0 = vld [vmem:[%s2837_s2 + $0x70] sm:$0xff]  ;;  %v283_v1 = vld [vmem:[%s2837_s2 + $0x60] sm:$0xff]  ;;  %s2848_s22 = smov (!%p2005_p3, %s1900_s22), 1  ;;  %v286_v22 = vld [vmem:[%s2837_s2 + $0x78] sm:$0xff]  ;;  %vm287_vm0 = vcmask 523264   ;;  %vm777_vm1 = vcmask 1041408  }
   0xc   : > { %v281_v2 = vld [vmem:[%s2837_s2 + $0x50] sm:$0xff]  ;;  %v2009_v3 = vand.u32 4294901760, %v285_v0  ;;  %v2011_v4 = vand.u32 4294901760, %v283_v1  ;;  %v279_v6 = vld [vmem:[%s2837_s2 + $0x40] sm:$0xff]  ;;  %s1905_s18 = sshll.u32 %s2848_s22, 1  ;;  %s1919_s19 = sshll.u32 %s2848_s22, 2 }
   0xd   : > { %v2013_v5 = vand.u32 4294901760, %v281_v2  ;;  %v277_v7 = vld [vmem:[%s2837_s2 + $0x30] sm:$0xff]  ;;  %v275_v8 = vld [vmem:[%s2837_s2 + $0x20] sm:$0xff]  ;;  %v2024_v9 = vand.u32 4294901760, %v279_v6  ;;  %v284_v30 = vld [vmem:[%s2837_s2 + $0x68] sm:$0xff]  ;;  %s258_s26 = scalar_lea.vmem %s2835_s0, %s1905_s18  ;;  %s263_s29 = scalar_lea.vmem %s2836_s1, %s1919_s19  ;;  %v2101_v34 = vand.u32 4294901760, %v286_v22 }
   0xe   : > { %v2026_v10 = vand.u32 4294901760, %v277_v7  ;;  %v2028_v11 = vand.u32 4294901760, %v275_v8  ;;  %v273_v12 = vld [vmem:[%s2837_s2 + $0x10] sm:$0xff]  ;;  %v271_v13 = vld [vmem:[%s2837_s2] sm:$0xff]  ;;  %300 = vmatpush.msra.mxu0 %v2009_v3  ;;  %v2038_v14 = vsub.f32 %v285_v0, %v2009_v3  ;;  %v2041_v15 = vsub.f32 %v283_v1, %v2011_v4  ;;  %432 = vmatpush.msra.mxu3 %v2009_v3  ;;  %v282_v38 = vld [vmem:[%s2837_s2 + $0x58] sm:$0xff]  ;;  %s1945_s18 = smov 127  }
   0xf   : > { %v2045_v16 = vsub.f32 %v281_v2, %v2013_v5  ;;  %v2047_v17 = vand.u32 4294901760, %v273_v12  ;;  %v2054_v18 = vsub.f32 %v279_v6, %v2024_v9  ;;  %v2062_v21 = vand.u32 4294901760, %v271_v13  ;;  %v270_v35 = vld [vmem:[%s263_s29] sm:$0xf]  ;;  %v280_v43 = vld [vmem:[%s2837_s2 + $0x48] sm:$0xff]  ;;  %v278_v47 = vld [vmem:[%s2837_s2 + $0x38] sm:$0xff] }
  0x10   : > { %v2057_v19 = vsub.f32 %v277_v7, %v2026_v10  ;;  %v2060_v20 = vsub.f32 %v275_v8, %v2028_v11  ;;  %395 = vmatpush.msra.mxu2 %v2038_v14  ;;  %302 = vmatpush.msra.mxu0 %v2011_v4  ;;  %v334_v23 = vand.u32 4294901760, %v2038_v14  ;;  %v340_v24 = vand.u32 4294901760, %v2041_v15  ;;  %766 = vst [vmem:[#allocation1] ss:$4 sm:$0xff] %v270_v35  ;;  %v269_v42 = vld [vmem:[%s258_s26] sm:$0x3] }
  0x11   : > { %v346_v25 = vand.u32 4294901760, %v2045_v16  ;;  %434 = vmatpush.msra.mxu3 %v2011_v4  ;;  %v352_v26 = vand.u32 4294901760, %v2054_v18  ;;  %v2078_v28 = vsub.f32 %v273_v12, %v2047_v17  ;;  %v2108_v37 = vsub.f32 %v271_v13, %v2062_v21  ;;  %v276_v56 = vld [vmem:[%s2837_s2 + $0x28] sm:$0xff]  ;;  %v274_v1 = vld [vmem:[%s2837_s2 + $0x18] sm:$0xff]  ;;  %s1946_s19 = smov 112   ;;  %s1951_s26 = smov 15  }
  0x12   : > { %v358_v27 = vand.u32 4294901760, %v2057_v19  ;;  %v364_v29 = vand.u32 4294901760, %v2060_v20  ;;  %398 = vmatpush.msra.mxu2 %v2041_v15  ;;  %304 = vmatpush.msra.mxu0 %v2013_v5  ;;  %v335_v31 = vsub.f32 %v2038_v14, %v334_v23  ;;  %v341_v32 = vsub.f32 %v2041_v15, %v340_v24 }
  0x13   : > { %v347_v33 = vsub.f32 %v2045_v16, %v346_v25  ;;  %436 = vmatpush.msra.mxu3 %v2013_v5  ;;  %v353_v36 = vsub.f32 %v2054_v18, %v352_v26  ;;  %v2115_v41 = vand.u32 4294901760, %v284_v30  ;;  %v370_v46 = vand.u32 4294901760, %v2078_v28 }
  0x14   : > { %v336_v39 = vand.u32 4294901760, %v335_v31  ;;  %401 = vmatpush.msra.mxu2 %v2045_v16  ;;  %306 = vmatpush.msra.mxu0 %v2024_v9  ;;  %v342_v40 = vand.u32 4294901760, %v341_v32  ;;  %v359_v44 = vsub.f32 %v2057_v19, %v358_v27  ;;  %v365_v45 = vsub.f32 %v2060_v20, %v364_v29 }
  0x15   : > { %438 = vmatpush.msra.mxu3 %v2024_v9  ;;  %v348_v48 = vand.u32 4294901760, %v347_v33  ;;  %v2133_v49 = vsub.f32 %v286_v22, %v2101_v34  ;;  %v2135_v50 = vand.u32 4294901760, %v282_v38  ;;  %v2138_v51 = vsub.f32 %v284_v30, %v2115_v41  ;;  %v272_v30 = vld [vmem:[%s2837_s2 + $0x8] sm:$0xff] }
  0x16   : > { %337 = vmatpush.msra.mxu1 %v336_v39  ;;  %404 = vmatpush.msra.mxu2 %v2054_v18  ;;  %v354_v52 = vand.u32 4294901760, %v353_v36  ;;  %v376_v53 = vand.u32 4294901760, %v2108_v37  ;;  %v289_v54 = vsel %vm287_vm0, %v269_v42, 0  ;;  %v2144_v55 = vand.u32 4294901760, %v280_v43 }
  0x17   : > { %308 = vmatpush.msra.mxu0 %v2026_v10  ;;  %440 = vmatpush.msra.mxu3 %v2026_v10  ;;  %v571_v57 = vand.u32 4294901760, %v2133_v49  ;;  %v577_v58 = vand.u32 4294901760, %v2138_v51  ;;  %v2152_v59 = vand.u32 4294901760, %v289_v54  ;;  %v2154_v60 = vand.u32 4294901760, %v278_v47 }
  0x18   : > { %343 = vmatpush.msra.mxu1 %v342_v40  ;;  %407 = vmatpush.msra.mxu2 %v2057_v19  ;;  %v360_v61 = vand.u32 4294901760, %v359_v44  ;;  %v371_v62 = vsub.f32 %v2078_v28, %v370_v46  ;;  %v2162_v63 = vsub.f32 %v282_v38, %v2135_v50  ;;  %v2165_v0 = vsub.f32 %v280_v43, %v2144_v55 }
  0x19   : > { %310 = vmatpush.msra.mxu0 %v2028_v11  ;;  %442 = vmatpush.msra.mxu3 %v2028_v11  ;;  %v572_v2 = vsub.f32 %v2133_v49, %v571_v57  ;;  %v578_v6 = vsub.f32 %v2138_v51, %v577_v58  ;;  %v2178_v7 = vsub.f32 %v289_v54, %v2152_v59  ;;  %v2180_v8 = vand.u32 4294901760, %v276_v56 }
  0x1a   : > { %349 = vmatpush.msra.mxu1 %v348_v48  ;;  %410 = vmatpush.msra.mxu2 %v2060_v20  ;;  %v366_v12 = vand.u32 4294901760, %v365_v45  ;;  %v377_v13 = vsub.f32 %v2108_v37, %v376_v53  ;;  %v583_v22 = vand.u32 4294901760, %v2162_v63  ;;  %v2196_v33 = vsub.f32 %v278_v47, %v2154_v60 }
  0x1b   : > { %312 = vmatpush.msra.mxu0 %v2047_v17  ;;  %444 = vmatpush.msra.mxu3 %v2047_v17  ;;  %v573_v31 = vand.u32 4294901760, %v572_v2  ;;  %v2193_v32 = vand.u32 4294901760, %v2178_v7  ;;  %v2198_v35 = vand.u32 4294901760, %v274_v1  ;;  %v372_v36 = vand.u32 4294901760, %v371_v62 }
  0x1c   : > { %355 = vmatpush.msra.mxu1 %v354_v52  ;;  %413 = vmatpush.msra.mxu2 %v2078_v28  ;;  %v589_v38 = vand.u32 4294901760, %v2165_v0  ;;  %v579_v39 = vand.u32 4294901760, %v578_v6  ;;  %v584_v40 = vsub.f32 %v2162_v63, %v583_v22  ;;  %v2208_v42 = vsub.f32 %v276_v56, %v2180_v8 }
  0x1d   : > { %314 = vmatpush.msra.mxu0 %v2062_v21  ;;  %446 = vmatpush.msra.mxu3 %v2062_v21  ;;  %v2210_v43 = vand.u32 4294901760, %v272_v30  ;;  %v318_v44 = vsub.f32 %v2178_v7, %v2193_v32  ;;  %v378_v45 = vand.u32 4294901760, %v377_v13  ;;  %v595_v47 = vand.u32 4294901760, %v2196_v33 }
  0x1e   : > { %361 = vmatpush.msra.mxu1 %v360_v61  ;;  %416 = vmatpush.msra.mxu2 %v2108_v37  ;;  %v2219_v48 = vsub.f32 %v274_v1, %v2198_v35  ;;  %v585_v14 = vand.u32 4294901760, %v584_v40  ;;  %v601_v52 = vand.u32 4294901760, %v2208_v42  ;;  %v767_v37 = vld.sshfl [vmem:[#allocation1] sm:$0xff pattern:$0x73625140]  ;;  %vm934_vm3 = vcmask 1043456  }
  0x1f   : > { %465 = vmatpush.msrb.mxu0 %v334_v23  ;;  %574 = vmatpush.msrb.mxu3 %v573_v31  ;;  %v590_v23 = vsub.f32 %v2165_v0, %v589_v38  ;;  %v2229_v54 = vsub.f32 %v272_v30, %v2210_v43  ;;  %v319_v15 = vand.u32 4294901760, %v318_v44  ;;  %v768_v1 = vld.sshfl [vmem:[#allocation1 + $0x8] sm:$0xff pattern:$0x73625140]  ;;  %vm949_vm7 = vcmask 1044480  }
  0x20   : > { %537 = vmatpush.msrb.mxu2 %v2101_v34  ;;  %367 = vmatpush.msra.mxu1 %v366_v12  ;;  %v607_v56 = vand.u32 4294901760, %v2219_v48  ;;  %v785_v12 = vlaneseq  ;;  %v2348_v30 = vld [vmem:[%s2840_s5 + $0x5] ss:$8 sm:$0x3]  ;;  %vm945_vm9 = vcmask 302080   ;;  %vm1474_vm13 = vcmask 1042432  }
  0x21   : > { %469 = vmatpush.msrb.mxu0 %v340_v24  ;;  %580 = vmatpush.msrb.mxu3 %v579_v39  ;;  %v596_v24 = vsub.f32 %v2196_v33, %v595_v47  ;;  %v591_v16 = vand.u32 4294901760, %v590_v23  ;;  %v613_v61 = vand.u32 4294901760, %v2229_v54  ;;  %vm1470_vm14 = vcmask 154624  }
  0x22   : > { %539 = vmatpush.msrb.mxu2 %v2115_v41  ;;  %373 = vmatpush.msra.mxu1 %v372_v36  ;;  %v608_v18 = vsub.f32 %v2219_v48, %v607_v56  ;;  %v2343_v13 = vand.u32 127, %v785_v12  ;;  %v857_v36 = vperm.slane %v2348_v30, 1  ;;  %vm1459_vm15 = vcmask 1045504  }
  0x23   : > { %473 = vmatpush.msrb.mxu0 %v346_v25  ;;  %419 = vmatmul.f32.vlgmr.msra.gmra.mxu2 %v2178_v7  ;;  %v602_v25 = vsub.f32 %v2208_v42, %v601_v52  ;;  %v614_v62 = vsub.f32 %v2229_v54, %v613_v61 }
  0x24   : > { %541 = vmatpush.msrb.mxu2 %v2135_v50  ;;  %379 = vmatpush.msra.mxu1 %v378_v45  ;;  %vm850_vm2 = vcmp.lt.s32.totalorder %v2343_v13, 127  ;;  %vm802_vm4 = vcmp.lt.s32.totalorder %v2343_v13, 16  ;;  %vm882_vm5 = vcmp.lt.s32.totalorder %v2343_v13, 112  ;;  %vm898_vm6 = vcmp.lt.s32.totalorder %v2343_v13, 111 }
  0x25   : > { %477 = vmatpush.msrb.mxu0 %v352_v26  ;;  %586 = vmatpush.msrb.mxu3 %v585_v14  ;;  %v603_v26 = vand.u32 4294901760, %v602_v25  ;;  %v2373_v14 = vld [vmem:[%s2840_s5 + $0x7] ss:$8 sm:$0x3]  ;;  %vm866_vm8 = vcmp.lt.s32.totalorder %v2343_v13, 113  ;;  %vm834_vm10 = vcmp.lt.s32.totalorder %v2343_v13, 1 }
  0x26   : > { %508 = vmatpush.msrb.mxu1 %v2009_v3  ;;  %543 = vmatpush.msrb.mxu2 %v2144_v55  ;;  %v597_v3 = vand.u32 4294901760, %v596_v24  ;;  %v2392_v25 = vld [vmem:[%s2840_s5 + $0x6] ss:$8 sm:$0x3]  ;;  %vm818_vm11 = vcmp.lt.s32.totalorder %v2343_v13, 15  ;;  %vm787_vm12 = vcmp.lt.s32.totalorder %v2343_v13, 17 }
  0x27   : > { %320 = vmatmul.f32.vlgmr.msra.gmra.mxu0 %v319_v15  ;;  %450 = vmatmul.f32.vlgmr.msra.gmra.mxu3 %v2193_v32 }
  0x28   : > { %510 = vmatpush.msrb.mxu1 %v2011_v4  ;;  %481 = vmatpush.msrb.mxu0 %v358_v27  ;;  %v609_v4 = vand.u32 4294901760, %v608_v18 }
  0x29   : > { %545 = vmatpush.msrb.mxu2 %v2154_v60  ;;  %592 = vmatpush.msrb.mxu3 %v591_v16  ;;  %v889_v16 = vperm.slane %v2373_v14, 1 }
  0x2a   : > { %512 = vmatpush.msrb.mxu1 %v2013_v5  ;;  %485 = vmatpush.msrb.mxu0 %v364_v29  ;;  %v615_v5 = vand.u32 4294901760, %v614_v62 }
  0x2b   : > { %381 = vmatmul.f32.vlgmr.msra.gmra.mxu1 %v2152_v59  ;;  %547 = vmatpush.msrb.mxu2 %v2180_v8 }
  0x2c   : > { %514 = vmatpush.msrb.mxu1 %v2024_v9  ;;  %598 = vmatpush.msrb.mxu3 %v597_v3  ;;  %v2398_v3 = vld [vmem:[%s2840_s5 + $0x3] ss:$8 sm:$0x3] }
  0x2d   : > { %489 = vmatpush.msrb.mxu0 %v370_v46  ;;  %549 = vmatpush.msrb.mxu2 %v2198_v35 }
  0x2e   : > { %516 = vmatpush.msrb.mxu1 %v2026_v10  ;;  %604 = vmatpush.msrb.mxu3 %v603_v26 }
  0x2f   : > { %493 = vmatpush.msrb.mxu0 %v376_v53  ;;  %551 = vmatpush.msrb.mxu2 %v2210_v43 }
  0x30   : > { %518 = vmatpush.msrb.mxu1 %v2028_v11  ;;  %610 = vmatpush.msrb.mxu3 %v609_v4  ;;  %v780_v4 = vld [vmem:[%s2838_s3] sm:$0x3] }
  0x31   : > { %495 = vmatmul.f32.vlgmr.msrb.gmra.mxu0 %v2152_v59  ;;  %702 = vmatpush.msra.mxu2 %v571_v57 }
  0x32   : > { %520 = vmatpush.msrb.mxu1 %v2047_v17  ;;  %616 = vmatpush.msrb.mxu3 %v615_v5 }
  0x33   : > { %632 = vmatpush.msra.mxu0 %v2133_v49  ;;  %706 = vmatpush.msra.mxu2 %v577_v58 }
  0x34   : > { %745 = vmatpush.msra.mxu3 %v2101_v34  ;;  %522 = vmatpush.msrb.mxu1 %v2062_v21 }
  0x35   : > { %524 = vmatmul.f32.vlgmr.msrb.gmra.mxu1 %v2152_v59  ;;  %635 = vmatpush.msra.mxu0 %v2138_v51 }
  0x36   : > { %669 = vmatpush.msra.mxu1 %v2101_v34  ;;  %710 = vmatpush.msra.mxu2 %v583_v22 }
  0x37   : > { %747 = vmatpush.msra.mxu3 %v2115_v41  ;;  %638 = vmatpush.msra.mxu0 %v2162_v63 }
  0x38   : > { %671 = vmatpush.msra.mxu1 %v2115_v41  ;;  %714 = vmatpush.msra.mxu2 %v589_v38 }
  0x39   : > { %749 = vmatpush.msra.mxu3 %v2135_v50  ;;  %557 = vmatmul.f32.vlgmr.msrb.gmra.mxu2 %v319_v15  ;;  %v2383_v15 = vld [vmem:[%s2840_s5 + $0x10] ss:$8 sm:$0x3] }
  0x3a   : > { %641 = vmatpush.msra.mxu0 %v2165_v0  ;;  %673 = vmatpush.msra.mxu1 %v2135_v50  ;;  %v904_v26 = vperm.slane %v2383_v15, 0  ;;  %v905_v62 = vperm.slane %v2383_v15, 1 }
  0x3b   : > { %718 = vmatpush.msra.mxu2 %v595_v47  ;;  %751 = vmatpush.msra.mxu3 %v2144_v55  ;;  %v2366_v47 = vld [vmem:[%s2840_s5 + $0x1] ss:$8 sm:$0x3] }
  0x3c   : > { %618 = vmatmul.f32.vlgmr.msrb.gmra.mxu3 %v2152_v59  ;;  %644 = vmatpush.msra.mxu0 %v2196_v33  ;;  %v856_v33 = vperm.slane %v2348_v30, 0 }
  0x3d   : > { %675 = vmatpush.msra.mxu1 %v2144_v55  ;;  %722 = vmatpush.msra.mxu2 %v601_v52  ;;  %v808_v52 = vperm.slane %v2366_v47, 0 }
  0x3e   : > { %753 = vmatpush.msra.mxu3 %v2154_v60  ;;  %647 = vmatpush.msra.mxu0 %v2208_v42 }
  0x3f   : > { %677 = vmatpush.msra.mxu1 %v2154_v60  ;;  %726 = vmatpush.msra.mxu2 %v607_v56  ;;  %v888_v56 = vperm.slane %v2373_v14, 0 }
  0x40   : > { %755 = vmatpush.msra.mxu3 %v2180_v8  ;;  %650 = vmatpush.msra.mxu0 %v2219_v48 }
  0x41   : > { %679 = vmatpush.msra.mxu1 %v2180_v8  ;;  %730 = vmatpush.msra.mxu2 %v613_v61 }
  0x42   : > { %757 = vmatpush.msra.mxu3 %v2198_v35  ;;  %732 = vmatmul.f32.vlgmr.msra.gmra.mxu2 %v2152_v59 }
  0x43   : > { %653 = vmatpush.msra.mxu0 %v2229_v54  ;;  %681 = vmatpush.msra.mxu1 %v2198_v35  ;;  %v809_v54 = vperm.slane %v2366_v47, 1 }
  0x44   : > { %759 = vmatpush.msra.mxu3 %v2210_v43  ;;  %656 = vmatmul.f32.vlgmr.msra.gmra.mxu0 %v2178_v7 }
  0x45   : > { %761 = vmatmul.f32.vlgmr.msra.gmra.mxu3 %v2152_v59  ;;  %683 = vmatpush.msra.mxu1 %v2210_v43 }
  0x46   : > { %687 = vmatmul.f32.vlgmr.msra.gmra.mxu1 %v2193_v32 }
  0xa4   : > { %v321_v9 = vpop.f32.mrf.mxu0 }
  0xa6   : > { %v420_v11 = vpop.f32.mrf.mxu2 }
  0xa8   : > { %v382_v10 = vpop.f32.mrf.mxu1 }
  0xa9   : > { %v383_v17 = vadd.f32 %v382_v10, %v321_v9  ;;  %v872_v10 = vperm.slane %v2392_v25, 0 }
  0xaa   : > { %v451_v20 = vpop.f32.mrf.mxu3 }
  0xab   : > { %v421_v19 = vadd.f32 %v420_v11, %v383_v17  ;;  %v873_v11 = vperm.slane %v2392_v25, 1 }
  0xad   : > { %v452_v21 = vadd.f32 %v451_v20, %v421_v19  ;;  %v2843_v20 = vperm.slane %v2398_v3, 0 }
  0xae   : > { %v496_v27 = vpop.f32.mrf.mxu0 }
  0xaf   : > { %v497_v28 = vadd.f32 %v496_v27, %v452_v21  ;;  %v2842_v21 = vperm.slane %v2398_v3, 1  ;;  %v2422_v27 = vld [vmem:[%s2840_s5 + $0x2] ss:$8 sm:$0x3] }
  0xb2   : > { %v525_v29 = vpop.f32.mrf.mxu1 }
  0xb3   : > { %v526_v34 = vadd.f32 %v525_v29, %v497_v28 }
  0xb5   : > { %v773_v41 = vrot.slane %v526_v34, 6 }
  0xb7   : > { %v2314_v46 = vsel %vm777_vm1, %v767_v37, %v773_v41  ;;  %v947_v41 = vsel %vm945_vm9, %v780_v4, 0 }
  0xb8   : > { %846 = vrot.lane.b32.xlu2 %v2314_v46, %s1945_s18  ;;  %878 = vrot.lane.b32.xlu1 %v2314_v46, %s1946_s19 }
  0xb9   : > { %894 = vrot.lane.b32.xlu0 %v2314_v46, %s1947_s20 }
  0xbc   : > { %v558_v49 = vpop.f32.mrf.mxu2 }
  0xbf   : > { %v619_v50 = vpop.f32.mrf.mxu3 }
  0xc0   : > { %v620_v51 = vadd.f32 %v619_v50, %v558_v49  ;;  %830 = vrot.lane.b32.xlu2 %v2314_v46, %s1948_s23  ;;  %798 = vrot.lane.b32.xlu1 %v2314_v46, %s1949_s24 }
  0xc1   : > { %v657_v53 = vpop.f32.mrf.mxu0  ;;  %862 = vrot.lane.b32.xlu0 %v2314_v46, %s1950_s25 }
  0xc2   : > { %v658_v55 = vadd.f32 %v657_v53, %v620_v51 }
  0xc3   : > { %v688_v57 = vpop.f32.mrf.mxu1 }
  0xc4   : > { %v689_v58 = vadd.f32 %v688_v57, %v658_v55  ;;  %v824_v57 = vperm.slane %v2422_v27, 0 }
  0xc5   : > { %v733_v59 = vpop.f32.mrf.mxu2 }
  0xc6   : > { %v734_v60 = vadd.f32 %v733_v59, %v689_v58 }
  0xc8   : > { %v762_v63 = vpop.f32.mrf.mxu3 }
  0xc9   : > { %v763_v0 = vadd.f32 %v762_v63, %v734_v60  ;;  %814 = vrot.lane.b32.xlu0 %v2314_v46, %s1951_s26  ;;  %v2450_v63 = vand.u32 4294901760, %v947_v41 }
  0xcb   : > { %v774_v2 = vrot.slane %v763_v0, 6 }
  0xcd   : > { %v779_v6 = vsel %vm777_vm1, %v768_v1, %v774_v2 }
  0xce   : > { %848 = vrot.lane.b32.xlu2 %v779_v6, %s1945_s18  ;;  %880 = vrot.lane.b32.xlu1 %v779_v6, %s1946_s19 }
  0xd1   : > { %896 = vrot.lane.b32.xlu0 %v779_v6, %s1947_s20 }
  0xd6   : > { %800 = vrot.lane.b32.xlu2 %v779_v6, %s1949_s24  ;;  %864 = vrot.lane.b32.xlu1 %v779_v6, %s1950_s25 }
  0xd9   : > { %832 = vrot.lane.b32.xlu0 %v779_v6, %s1948_s23 }
  0xde   : > { %781 = vrot.lane.b32.xlu2 %v2314_v46, %s1952_s27  ;;  %816 = vrot.lane.b32.xlu1 %v779_v6, %s1951_s26 }
  0xe1   : > { %783 = vrot.lane.b32.xlu0 %v779_v6, %s1952_s27 }
 0x112   : > { %v847_v7 = vpop.permute.xlu2 %846 }
 0x11a   : > { %v2341_v8 = vpop.permute.xlu2 %830 }
 0x128   : > { %v849_v32 = vpop.permute.xlu2 %848 }
 0x129   : > { %v851_v35 = vsel %vm850_vm2, %v847_v7, %v849_v32  ;;  %v852_v39 = vsel %vm850_vm2, %v849_v32, %v847_v7 }
 0x12a   : > { %v879_v31 = vpop.permute.xlu1 %878  ;;  %v860_v40 = vmul.f32 %v856_v33, %v851_v35  ;;  %v861_v42 = vmul.f32 %v857_v36, %v852_v39 }
 0x12b   : > { %v895_v22 = vpop.permute.xlu0 %894 }
 0x12c   : > { %v924_v44 = vrot.slane %v860_v40, 4  ;;  %v925_v45 = vrot.slane %v861_v42, 4 }
 0x12e   : > { %v939_v23 = vsel %vm934_vm3, %v2314_v46, %v924_v44  ;;  %v940_v24 = vsel %vm934_vm3, %v779_v6, %v925_v45  ;;  %v825_v45 = vperm.slane %v2422_v27, 1 }
 0x12f   : > { %v2400_v18 = vand.u32 4294901760, %v939_v23  ;;  %v2408_v5 = vand.u32 4294901760, %v940_v24 }
 0x130   : > { %v801_v28 = vpop.permute.xlu2 %800 }
 0x131   : > { %v2429_v37 = vsub.f32 %v939_v23, %v2400_v18  ;;  %v2440_v53 = vsub.f32 %v940_v24, %v2408_v5  ;;  %v2484_v23 = vsub.f32 %v947_v41, %v2450_v63 }
 0x132   : > { %v799_v43 = vpop.permute.xlu1 %798 }
 0x133   : > { %v2355_v38 = vpop.permute.xlu0 %862  ;;  %v804_v46 = vsel %vm802_vm4, %v801_v28, %v799_v43  ;;  %v803_v58 = vsel %vm802_vm4, %v799_v43, %v801_v28  ;;  %v1011_v7 = vand.u32 4294901760, %v2429_v37 }
 0x134   : > { %v2454_v0 = vmul.f32 %v808_v52, %v804_v46  ;;  %v2475_v43 = vmul.f32 %v809_v54, %v803_v58 }
 0x136   : > { %v912_v41 = vrot.slane %v2454_v0, 4 }
 0x13b   : > { %v2368_v48 = vpop.permute.xlu0 %814 }
 0x140   : > { %v881_v61 = vpop.permute.xlu1 %880 }
 0x141   : > { %v883_v9 = vsel %vm882_vm5, %v879_v31, %v881_v61  ;;  %v884_v17 = vsel %vm882_vm5, %v881_v61, %v879_v31 }
 0x142   : > { %v892_v49 = vmul.f32 %v888_v56, %v883_v9  ;;  %v893_v55 = vmul.f32 %v889_v16, %v884_v17 }
 0x143   : > { %v897_v19 = vpop.permute.xlu0 %896 }
 0x144   : > { %v899_v29 = vsel %vm898_vm6, %v895_v22, %v897_v19  ;;  %v900_v34 = vsel %vm898_vm6, %v897_v19, %v895_v22  ;;  %v930_v12 = vrot.slane %v892_v49, 4  ;;  %v931_v35 = vrot.slane %v893_v55, 4 }
 0x145   : > { %v908_v50 = vmul.f32 %v904_v26, %v899_v29  ;;  %v909_v51 = vmul.f32 %v905_v62, %v900_v34  ;;  %v2506_v34 = vld [vmem:[%s2840_s5] ss:$8 sm:$0x3]  ;;  %v1012_v49 = vsub.f32 %v2429_v37, %v1011_v7  ;;  %v2526_v55 = vand.u32 4294901760, %v2484_v23 }
 0x147   : > { %v943_v59 = vsel %vm934_vm3, %v908_v50, 1.0  ;;  %v944_v60 = vsel %vm934_vm3, %v909_v51, 1.0 }
 0x148   : > { %v951_v1 = vsel %vm949_vm7, %v943_v59, 0  ;;  %v954_v2 = vsel %vm949_vm7, %v944_v60, 0  ;;  %v865_v6 = vpop.permute.xlu1 %864 }
 0x149   : > { %v2459_v22 = vand.u32 4294901760, %v951_v1  ;;  %v867_v31 = vsel %vm866_vm8, %v2355_v38, %v865_v6  ;;  %v868_v32 = vsel %vm866_vm8, %v865_v6, %v2355_v38  ;;  %v2467_v39 = vand.u32 4294901760, %v954_v2 }
 0x14a   : > { %v876_v40 = vmul.f32 %v872_v10, %v867_v31  ;;  %v877_v42 = vmul.f32 %v873_v11, %v868_v32 }
 0x14b   : > { %v2478_v44 = vsub.f32 %v951_v1, %v2459_v22  ;;  %968 = vmatpush.msrb.mxu0 %v2459_v22  ;;  %1076 = vmatpush.msrb.mxu3 %v2459_v22  ;;  %v833_v38 = vpop.permute.xlu0 %832  ;;  %v792_v1 = vperm.slane %v2506_v34, 0 }
 0x14c   : > { %v941_v24 = vsel %vm934_vm3, %v876_v40, %v930_v12  ;;  %v942_v61 = vsel %vm934_vm3, %v877_v42, %v931_v35  ;;  %v835_v4 = vsel %vm834_vm10, %v2341_v8, %v833_v38  ;;  %v836_v9 = vsel %vm834_vm10, %v833_v38, %v2341_v8  ;;  %v782_v38 = vpop.permute.xlu2 %781 }
 0x14d   : > { %v2494_v17 = vand.u32 4294901760, %v942_v61  ;;  %v844_v19 = vmul.f32 %v2843_v20, %v836_v9  ;;  %v845_v28 = vmul.f32 %v2842_v21, %v835_v4  ;;  %v2500_v29 = vand.u32 4294901760, %v941_v24  ;;  %1045 = vmatpush.msrb.mxu2 %v2478_v44 }
 0x14e   : > { %v2510_v8 = vsub.f32 %v954_v2, %v2467_v39  ;;  %v999_v46 = vand.u32 4294901760, %v2478_v44  ;;  %v793_v12 = vperm.slane %v2506_v34, 1  ;;  %v980_v9 = vsub.f32 %v2484_v23, %v2526_v55 }
 0x14f   : > { %v2517_v50 = vsub.f32 %v942_v61, %v2494_v17  ;;  %970 = vmatpush.msrb.mxu0 %v2500_v29  ;;  %1078 = vmatpush.msrb.mxu3 %v2500_v29  ;;  %v2522_v51 = vsub.f32 %v941_v24, %v2500_v29  ;;  %v918_v58 = vrot.slane %v844_v19, 4  ;;  %v919_v59 = vrot.slane %v845_v28, 4 }
 0x150   : > { %v817_v60 = vpop.permute.xlu1 %816  ;;  %v1000_v0 = vsub.f32 %v2478_v44, %v999_v46  ;;  %v1197_v42 = vand.u32 4294901760, %v2510_v8 }
 0x151   : > { %v819_v2 = vsel %vm818_vm11, %v2368_v48, %v817_v60  ;;  %v820_v6 = vsel %vm818_vm11, %v817_v60, %v2368_v48  ;;  %972 = vmatpush.msrb.mxu0 %v2400_v18  ;;  %1048 = vmatpush.msrb.mxu2 %v2522_v51  ;;  %v1005_v31 = vand.u32 4294901760, %v2522_v51  ;;  %v913_v48 = vrot.slane %v2475_v43, 4 }
 0x152   : > { %v828_v32 = vmul.f32 %v824_v57, %v820_v6  ;;  %v829_v35 = vmul.f32 %v825_v45, %v819_v2  ;;  %1080 = vmatpush.msrb.mxu3 %v2400_v18  ;;  %v1001_v40 = vand.u32 4294901760, %v1000_v0  ;;  %v1203_v4 = vand.u32 4294901760, %v2517_v50 }
 0x153   : > { %1051 = vmatpush.msrb.mxu2 %v2429_v37  ;;  %v784_v24 = vpop.permute.xlu0 %783  ;;  %v1006_v61 = vsub.f32 %v2522_v51, %v1005_v31 }
 0x154   : > { %v937_v19 = vsel %vm934_vm3, %v828_v32, %v918_v58  ;;  %v938_v28 = vsel %vm934_vm3, %v829_v35, %v919_v59  ;;  %1002 = vmatpush.msrb.mxu1 %v1001_v40  ;;  %v788_v60 = vsel %vm787_vm12, %v782_v38, %v784_v24  ;;  %v789_v43 = vsel %vm787_vm12, %v784_v24, %v782_v38 }
 0x155   : > { %v2560_v0 = vand.u32 4294901760, %v938_v28  ;;  %v796_v51 = vmul.f32 %v792_v1, %v789_v43  ;;  %v797_v2 = vmul.f32 %v793_v12, %v788_v60  ;;  %v2566_v6 = vand.u32 4294901760, %v937_v19 }
 0x156   : > { %v1007_v58 = vand.u32 4294901760, %v1006_v61  ;;  %v1198_v59 = vsub.f32 %v2510_v8, %v1197_v42  ;;  %v1209_v38 = vand.u32 4294901760, %v2440_v53  ;;  %v1013_v61 = vand.u32 4294901760, %v1012_v49 }
 0x157   : > { %v2572_v32 = vsub.f32 %v938_v28, %v2560_v0  ;;  %v935_v35 = vsel %vm934_vm3, %v796_v51, %v912_v41  ;;  %v936_v40 = vsel %vm934_vm3, %v797_v2, %v913_v48  ;;  %974 = vmatpush.msrb.mxu0 %v2566_v6  ;;  %1082 = vmatpush.msrb.mxu3 %v2566_v6  ;;  %v981_v41 = vand.u32 4294901760, %v980_v9 }
 0x158   : > { %v2579_v24 = vand.u32 4294901760, %v936_v40  ;;  %1008 = vmatpush.msrb.mxu1 %v1007_v58  ;;  %v1016_v60 = vsub.f32 %v937_v19, %v2566_v6  ;;  %v975_v43 = vand.u32 4294901760, %v935_v35  ;;  %v1204_v28 = vsub.f32 %v2517_v50, %v1203_v4 }
 0x159   : > { %v1215_v48 = vand.u32 4294901760, %v2572_v32  ;;  %v1199_v2 = vand.u32 4294901760, %v1198_v59  ;;  %v1210_v49 = vsub.f32 %v2440_v53, %v1209_v38 }
 0x15a   : > { %v2587_v51 = vsub.f32 %v936_v40, %v2579_v24  ;;  %1014 = vmatpush.msrb.mxu1 %v1013_v61  ;;  %1054 = vmatpush.msrb.mxu2 %v1016_v60  ;;  %v1022_v21 = vsub.f32 %v935_v35, %v975_v43  ;;  %v1017_v20 = vand.u32 4294901760, %v1016_v60  ;;  %v1205_v40 = vand.u32 4294901760, %v1204_v28 }
 0x15b   : > { %976 = vmatpush.msrb.mxu0 %v975_v43  ;;  %1084 = vmatpush.msrb.mxu3 %v975_v43  ;;  %v1216_v59 = vsub.f32 %v2572_v32, %v1215_v48 }
 0x15c   : > { %v1018_v9 = vsub.f32 %v1016_v60, %v1017_v20  ;;  %v1023_v19 = vand.u32 4294901760, %v1022_v21  ;;  %v1221_v58 = vand.u32 4294901760, %v2587_v51  ;;  %1057 = vmatpush.msrb.mxu2 %v1022_v21  ;;  %982 = vmatmul.f32.vlgmr.msrb.gmra.mxu0 %v981_v41 }
 0x15d   : > { %1106 = vmatpush.msra.mxu0 %v999_v46  ;;  %1200 = vmatpush.msra.mxu3 %v1199_v2  ;;  %v1211_v46 = vand.u32 4294901760, %v1210_v49  ;;  %v1217_v28 = vand.u32 4294901760, %v1216_v59 }
 0x15e   : > { %v1019_v35 = vand.u32 4294901760, %v1018_v9  ;;  %1166 = vmatpush.msra.mxu2 %v2467_v39  ;;  %v1024_v61 = vsub.f32 %v1022_v21, %v1023_v19  ;;  %v1222_v44 = vsub.f32 %v2587_v51, %v1221_v58  ;;  %1088 = vmatmul.f32.vlgmr.msrb.gmra.mxu3 %v2526_v55 }
 0x15f   : > { %1110 = vmatpush.msra.mxu0 %v1005_v31  ;;  %1206 = vmatpush.msra.mxu3 %v1205_v40 }
 0x160   : > { %1060 = vmatmul.f32.vlgmr.msrb.gmra.mxu2 %v2484_v23  ;;  %1020 = vmatpush.msrb.mxu1 %v1019_v35  ;;  %v1025_v60 = vand.u32 4294901760, %v1024_v61  ;;  %v1223_v31 = vand.u32 4294901760, %v1222_v44 }
 0x161   : > { %1114 = vmatpush.msra.mxu0 %v1011_v7  ;;  %1168 = vmatpush.msra.mxu2 %v2494_v17 }
 0x162   : > { %1212 = vmatpush.msra.mxu3 %v1211_v46  ;;  %1026 = vmatpush.msrb.mxu1 %v1025_v60 }
 0x163   : > { %1118 = vmatpush.msra.mxu0 %v1017_v20  ;;  %1170 = vmatpush.msra.mxu2 %v2408_v5 }
 0x164   : > { %1218 = vmatpush.msra.mxu3 %v1217_v28  ;;  %1028 = vmatmul.f32.vlgmr.msrb.gmra.mxu1 %v2450_v63 }
 0x165   : > { %1122 = vmatpush.msra.mxu0 %v1023_v19  ;;  %1172 = vmatpush.msra.mxu2 %v2560_v0 }
 0x166   : > { %1140 = vmatpush.msra.mxu1 %v2459_v22  ;;  %1224 = vmatpush.msra.mxu3 %v1223_v31 }
 0x167   : > { %1243 = vmatpush.msrb.mxu0 %v2510_v8  ;;  %1174 = vmatpush.msra.mxu2 %v2579_v24 }
 0x168   : > { %1338 = vmatpush.msrb.mxu3 %v2467_v39  ;;  %1142 = vmatpush.msra.mxu1 %v2500_v29 }
 0x169   : > { %1246 = vmatpush.msrb.mxu0 %v2517_v50  ;;  %1304 = vmatpush.msrb.mxu2 %v1197_v42 }
 0x16a   : > { %1340 = vmatpush.msrb.mxu3 %v2494_v17  ;;  %1144 = vmatpush.msra.mxu1 %v2400_v18 }
 0x16b   : > { %1249 = vmatpush.msrb.mxu0 %v2440_v53  ;;  %1308 = vmatpush.msrb.mxu2 %v1203_v4 }
 0x16c   : > { %1342 = vmatpush.msrb.mxu3 %v2408_v5  ;;  %1124 = vmatmul.f32.vlgmr.msra.gmra.mxu0 %v2450_v63 }
 0x16d   : > { %1146 = vmatpush.msra.mxu1 %v2566_v6  ;;  %1252 = vmatpush.msrb.mxu0 %v2572_v32 }
 0x16e   : > { %1312 = vmatpush.msrb.mxu2 %v1209_v38  ;;  %1344 = vmatpush.msrb.mxu3 %v2560_v0 }
 0x16f   : > { %1148 = vmatpush.msra.mxu1 %v975_v43  ;;  %1180 = vmatmul.f32.vlgmr.msra.gmra.mxu2 %v981_v41 }
 0x170   : > { %1150 = vmatmul.f32.vlgmr.msra.gmra.mxu1 %v2450_v63  ;;  %1255 = vmatpush.msrb.mxu0 %v2587_v51 }
 0x171   : > { %1274 = vmatpush.msrb.mxu1 %v2467_v39  ;;  %1316 = vmatpush.msrb.mxu2 %v1215_v48 }
 0x172   : > { %1346 = vmatpush.msrb.mxu3 %v2579_v24 }
 0x173   : > { %1226 = vmatmul.f32.vlgmr.msra.gmra.mxu3 %v2450_v63  ;;  %1276 = vmatpush.msrb.mxu1 %v2494_v17 }
 0x174   : > { %1320 = vmatpush.msrb.mxu2 %v1221_v58  ;;  %1258 = vmatmul.f32.vlgmr.msrb.gmra.mxu0 %v2484_v23 }
 0x175   : > { %1278 = vmatpush.msrb.mxu1 %v2408_v5 }
 0x177   : > { %1280 = vmatpush.msrb.mxu1 %v2560_v0  ;;  %1322 = vmatmul.f32.vlgmr.msrb.gmra.mxu2 %v2450_v63 }
 0x179   : > { %1282 = vmatpush.msrb.mxu1 %v2579_v24 }
 0x17a   : > { %1286 = vmatmul.f32.vlgmr.msrb.gmra.mxu1 %v2526_v55 }
 0x17b   : > { %1348 = vmatmul.f32.vlgmr.msrb.gmra.mxu3 %v2450_v63 }
 0x1d9   : > { %v983_v18 = vpop.f32.mrf.mxu0 }
 0x1e1   : > { %v1029_v20 = vpop.f32.mrf.mxu1  ;;  %v1089_v7 = vpop.f32.mrf.mxu3 }
 0x1e2   : > { %v1030_v37 = vadd.f32 %v1029_v20, %v983_v18 }
 0x1e3   : > { %v1061_v21 = vpop.f32.mrf.mxu2 }
 0x1e4   : > { %v1062_v53 = vadd.f32 %v1061_v21, %v1030_v37 }
 0x1e6   : > { %v1090_v22 = vadd.f32 %v1089_v7, %v1062_v53 }
 0x1e9   : > { %v1125_v39 = vpop.f32.mrf.mxu0 }
 0x1ea   : > { %v1126_v23 = vadd.f32 %v1125_v39, %v1090_v22 }
 0x1ed   : > { %v1151_v5 = vpop.f32.mrf.mxu1 }
 0x1ee   : > { %v1152_v17 = vadd.f32 %v1151_v5, %v1126_v23 }
 0x1f0   : > { %v2643_v29 = vmax.f32 %v1152_v17, 0.0  ;;  %v1354_v17 = vld [vmem:[%s2839_s4] sm:$0xf] }
 0x1f1   : > { %v1259_v50 = vpop.f32.mrf.mxu0 }
 0x1f2   : > { %1411 = vrot.lane.b32.xlu2 %v2643_v29, %s1947_s20  ;;  %1395 = vrot.lane.b32.xlu0 %v2643_v29, %s1950_s25  ;;  %v1181_v63 = vpop.f32.mrf.mxu2 }
 0x1f3   : > { %1387 = vrot.lane.b32.xlu1 %v2643_v29, %s1945_s18 }
 0x1f6   : > { %v1227_v8 = vpop.f32.mrf.mxu3 }
 0x1f7   : > { %v1228_v55 = vadd.f32 %v1227_v8, %v1181_v63  ;;  %v1287_v42 = vpop.f32.mrf.mxu1 }
 0x1f9   : > { %v1260_v4 = vadd.f32 %v1259_v50, %v1228_v55 }
 0x1fa   : > { %1371 = vrot.lane.b32.xlu2 %v2643_v29, %s1951_s26  ;;  %1403 = vrot.lane.b32.xlu0 %v2643_v29, %s1946_s19  ;;  %v1323_v0 = vpop.f32.mrf.mxu2 }
 0x1fb   : > { %v1288_v6 = vadd.f32 %v1287_v42, %v1260_v4  ;;  %1363 = vrot.lane.b32.xlu1 %v2643_v29, %s1949_s24  ;;  %v1472_v42 = vsel %vm1470_vm14, %v1354_v17, 0 }
 0x1fd   : > { %v1324_v32 = vadd.f32 %v1323_v0, %v1288_v6 }
 0x1fe   : > { %v1349_v38 = vpop.f32.mrf.mxu3 }
 0x1ff   : > { %v1350_v24 = vadd.f32 %v1349_v38, %v1324_v32 }
 0x201   : > { %v2657_v43 = vmax.f32 %v1350_v24, 0.0 }
 0x203   : > { %1355 = vrot.lane.b32.xlu1 %v2643_v29, %s1952_s27  ;;  %1413 = vrot.lane.b32.xlu0 %v2657_v43, %s1947_s20  ;;  %s1920_s20 = sshll.u32 %s2848_s22, 3 }
 0x204   : > { %1389 = vrot.lane.b32.xlu2 %v2657_v43, %s1945_s18 }
 0x20b   : > { %1373 = vrot.lane.b32.xlu0 %v2657_v43, %s1951_s26  ;;  %1397 = vrot.lane.b32.xlu1 %v2657_v43, %s1950_s25  ;;  %s268_s25 = scalar_lea.vmem %s2841_s6, %s1920_s20 }
 0x20c   : > { %1365 = vrot.lane.b32.xlu2 %v2657_v43, %s1949_s24 }
 0x213   : > { %1379 = vrot.lane.b32.xlu0 %v2643_v29, %s1948_s23  ;;  %1405 = vrot.lane.b32.xlu1 %v2657_v43, %s1946_s19 }
 0x214   : > { %1357 = vrot.lane.b32.xlu2 %v2657_v43, %s1952_s27 }
 0x21b   : > { %1381 = vrot.lane.b32.xlu1 %v2657_v43, %s1948_s23 }
 0x24c   : > { %v1412_v41 = vpop.permute.xlu2 %1411 }
 0x254   : > { %v1372_v2 = vpop.permute.xlu2 %1371 }
 0x25e   : > { %v1390_v19 = vpop.permute.xlu2 %1389 }
 0x264   : > { %v1396_v48 = vpop.permute.xlu0 %1395 }
 0x265   : > { %v1388_v51 = vpop.permute.xlu1 %1387 }
 0x266   : > { %v1391_v44 = vsel %vm850_vm2, %v1388_v51, %v1390_v19  ;;  %v1392_v18 = vsel %vm850_vm2, %v1390_v19, %v1388_v51  ;;  %v1366_v20 = vpop.permute.xlu2 %1365 }
 0x267   : > { %v1394_v15 = vmul.f32 %v1392_v18, %v857_v36 }
 0x269   : > { %v1440_v63 = vrot.slane %v1394_v15, 6 }
 0x26b   : > { %v1463_v32 = vsel %vm777_vm1, %v2657_v43, %v1440_v63  ;;  %v2748_v43 = vand.u32 4294901760, %v1472_v42 }
 0x26c   : > { %v1404_v49 = vpop.permute.xlu0 %1403 }
 0x26d   : > { %v1364_v9 = vpop.permute.xlu1 %1363  ;;  %v2772_v27 = vsub.f32 %v1472_v42, %v2748_v43 }
 0x26e   : > { %v1358_v38 = vpop.permute.xlu2 %1357  ;;  %v1367_v51 = vsel %vm802_vm4, %v1364_v9, %v1366_v20 }
 0x26f   : > { %v2794_v13 = vand.u32 4294901760, %v2772_v27 }
 0x271   : > { %v1503_v42 = vsub.f32 %v2772_v27, %v2794_v13 }
 0x275   : > { %v1356_v58 = vpop.permute.xlu1 %1355  ;;  %v1414_v40 = vpop.permute.xlu0 %1413 }
 0x276   : > { %v1415_v59 = vsel %vm898_vm6, %v1412_v41, %v1414_v40  ;;  %v1416_v61 = vsel %vm898_vm6, %v1414_v40, %v1412_v41 }
 0x277   : > { %v1417_v35 = vmul.f32 %v1415_v59, %v904_v26  ;;  %v1418_v28 = vmul.f32 %v1416_v61, %v905_v62  ;;  %v1393_v26 = vmul.f32 %v1391_v44, %v856_v33 }
 0x279   : > { %v1468_v46 = vsel %vm777_vm1, %v1417_v35, 1.0  ;;  %v1469_v62 = vsel %vm777_vm1, %v1418_v28, 1.0  ;;  %v1439_v7 = vrot.slane %v1393_v26, 6  ;;  %v1370_v35 = vmul.f32 %v1367_v51, %v809_v54 }
 0x27a   : > { %v1476_v60 = vsel %vm1474_vm13, %v1468_v46, 0  ;;  %v1479_v39 = vsel %vm1474_vm13, %v1469_v62, 0  ;;  %v2846_v62 = vperm.slane %v2398_v3, 1 }
 0x27b   : > { %v2691_v31 = vand.u32 4294901760, %v1476_v60  ;;  %v1462_v8 = vsel %vm777_vm1, %v2643_v29, %v1439_v7  ;;  %v2726_v55 = vand.u32 4294901760, %v1479_v39  ;;  %v1422_v34 = vrot.slane %v1370_v35, 6 }
 0x27d   : > { %v2698_v21 = vsub.f32 %v1476_v60, %v2691_v31  ;;  %1495 = vmatpush.msra.mxu0 %v2691_v31  ;;  %1587 = vmatpush.msra.mxu3 %v2691_v31  ;;  %v1398_v37 = vpop.permute.xlu1 %1397  ;;  %v1374_v23 = vpop.permute.xlu0 %1373  ;;  %v2751_v40 = vsub.f32 %v1479_v39, %v2726_v55 }
 0x27e   : > { %v1399_v53 = vsel %vm866_vm8, %v1396_v48, %v1398_v37  ;;  %v1400_v33 = vsel %vm866_vm8, %v1398_v37, %v1396_v48  ;;  %v1376_v25 = vsel %vm818_vm11, %v1374_v23, %v1372_v2  ;;  %v1375_v24 = vsel %vm818_vm11, %v1372_v2, %v1374_v23 }
 0x27f   : > { %1560 = vmatpush.msra.mxu2 %v2698_v21  ;;  %v1524_v22 = vand.u32 4294901760, %v2698_v21  ;;  %v1401_v30 = vmul.f32 %v1399_v53, %v872_v10  ;;  %v1402_v36 = vmul.f32 %v1400_v33, %v873_v11  ;;  %v1368_v10 = vsel %vm802_vm4, %v1366_v20, %v1364_v9 }
 0x280   : > { %v1369_v19 = vmul.f32 %v1368_v10, %v808_v52  ;;  %v1378_v9 = vmul.f32 %v1375_v24, %v825_v45  ;;  %v1696_v18 = vand.u32 4294901760, %v2751_v40 }
 0x281   : > { %v1525_v5 = vsub.f32 %v2698_v21, %v1524_v22  ;;  %v1445_v4 = vrot.slane %v1401_v30, 4  ;;  %v1446_v0 = vrot.slane %v1402_v36, 4 }
 0x282   : > { %v1421_v45 = vrot.slane %v1369_v19, 6  ;;  %v1428_v26 = vrot.slane %v1378_v9, 4  ;;  %v1697_v63 = vsub.f32 %v2751_v40, %v1696_v18 }
 0x283   : > { %v1526_v50 = vand.u32 4294901760, %v1525_v5  ;;  %v1464_v52 = vsel %vm934_vm3, %v1462_v8, %v1445_v4  ;;  %v1465_v59 = vsel %vm934_vm3, %v1463_v32, %v1446_v0 }
 0x285   : > { %v1406_v11 = vpop.permute.xlu1 %1405  ;;  %1527 = vmatpush.msra.mxu1 %v1526_v50  ;;  %v1380_v54 = vpop.permute.xlu0 %1379 }
 0x286   : > { %v1407_v6 = vsel %vm882_vm5, %v1404_v49, %v1406_v11  ;;  %v1408_v29 = vsel %vm882_vm5, %v1406_v11, %v1404_v49  ;;  %v1360_v49 = vsel %vm787_vm12, %v1358_v38, %v1356_v58 }
 0x287   : > { %v1409_v41 = vmul.f32 %v1407_v6, %v888_v56  ;;  %v1410_v48 = vmul.f32 %v1408_v29, %v889_v16  ;;  %v1377_v56 = vmul.f32 %v1376_v25, %v824_v57  ;;  %v1359_v16 = vsel %vm787_vm12, %v1356_v58, %v1358_v38 }
 0x288   : > { %v1361_v57 = vmul.f32 %v1360_v49, %v792_v1  ;;  %v1362_v60 = vmul.f32 %v1359_v16, %v793_v12  ;;  %v2845_v12 = vperm.slane %v2398_v3, 0  ;;  %v1698_v6 = vand.u32 4294901760, %v1697_v63 }
 0x289   : > { %v1451_v2 = vrot.slane %v1409_v41, 2  ;;  %v1452_v14 = vrot.slane %v1410_v48, 2  ;;  %v1427_v47 = vrot.slane %v1377_v56, 4  ;;  %v1504_v41 = vand.u32 4294901760, %v1503_v42 }
 0x28a   : > { %v1455_v7 = vsel %vm777_vm1, %v1361_v57, %v1421_v45  ;;  %v1456_v23 = vsel %vm777_vm1, %v1362_v60, %v1422_v34 }
 0x28b   : > { %v1466_v61 = vsel %vm1459_vm15, %v1464_v52, %v1451_v2  ;;  %v1467_v44 = vsel %vm1459_vm15, %v1465_v59, %v1452_v14  ;;  %v1457_v17 = vsel %vm934_vm3, %v1455_v7, %v1427_v47  ;;  %v1458_v3 = vsel %vm934_vm3, %v1456_v23, %v1428_v26 }
 0x28c   : > { %v2767_v46 = vand.u32 4294901760, %v1467_v44  ;;  %v2769_v58 = vand.u32 4294901760, %v1466_v61 }
 0x28d   : > { %v1382_v28 = vpop.permute.xlu1 %1381 }
 0x28e   : > { %v2778_v20 = vsub.f32 %v1467_v44, %v2767_v46  ;;  %v1383_v1 = vsel %vm834_vm10, %v1380_v54, %v1382_v28  ;;  %v1384_v37 = vsel %vm834_vm10, %v1382_v28, %v1380_v54  ;;  %1497 = vmatpush.msra.mxu0 %v2769_v58  ;;  %1589 = vmatpush.msra.mxu3 %v2769_v58 }
 0x28f   : > { %v1385_v15 = vmul.f32 %v1384_v37, %v2845_v12  ;;  %v1386_v53 = vmul.f32 %v1383_v1, %v2846_v62  ;;  %v1529_v33 = vsub.f32 %v1466_v61, %v2769_v58 }
 0x290   : > { %v1702_v39 = vand.u32 4294901760, %v2778_v20 }
 0x291   : > { %v1433_v30 = vrot.slane %v1385_v15, 2  ;;  %v1434_v36 = vrot.slane %v1386_v53, 2  ;;  %1563 = vmatpush.msra.mxu2 %v1529_v33  ;;  %v1530_v5 = vand.u32 4294901760, %v1529_v33 }
 0x292   : > { %v1703_v11 = vsub.f32 %v2778_v20, %v1702_v39 }
 0x293   : > { %v1460_v8 = vsel %vm1459_vm15, %v1457_v17, %v1433_v30  ;;  %v1461_v50 = vsel %vm1459_vm15, %v1458_v3, %v1434_v36  ;;  %v1531_v10 = vsub.f32 %v1529_v33, %v1530_v5 }
 0x294   : > { %v1498_v25 = vand.u32 4294901760, %v1460_v8  ;;  %v1670_v4 = vand.u32 4294901760, %v1461_v50  ;;  %v1704_v38 = vand.u32 4294901760, %v1703_v11 }
 0x295   : > { %v1532_v0 = vand.u32 4294901760, %v1531_v10 }
 0x296   : > { %1499 = vmatpush.msra.mxu0 %v1498_v25  ;;  %1591 = vmatpush.msra.mxu3 %v1498_v25  ;;  %v1535_v29 = vsub.f32 %v1460_v8, %v1498_v25  ;;  %v1707_v32 = vsub.f32 %v1461_v50, %v1670_v4 }
 0x297   : > { %1533 = vmatpush.msra.mxu1 %v1532_v0  ;;  %1505 = vmatmul.f32.vlgmr.msra.gmra.mxu0 %v1504_v41 }
 0x298   : > { %1615 = vmatpush.msrb.mxu0 %v1524_v22  ;;  %1699 = vmatpush.msrb.mxu3 %v1698_v6  ;;  %v1536_v24 = vand.u32 4294901760, %v1535_v29  ;;  %v1708_v48 = vand.u32 4294901760, %v1707_v32 }
 0x299   : > { %1566 = vmatpush.msra.mxu2 %v1535_v29  ;;  %1595 = vmatmul.f32.vlgmr.msra.gmra.mxu3 %v2794_v13 }
 0x29a   : > { %1619 = vmatpush.msrb.mxu0 %v1530_v5  ;;  %1705 = vmatpush.msrb.mxu3 %v1704_v38  ;;  %v1537_v51 = vsub.f32 %v1535_v29, %v1536_v24  ;;  %v1709_v19 = vsub.f32 %v1707_v32, %v1708_v48 }
 0x29b   : > { %1667 = vmatpush.msrb.mxu2 %v2726_v55 }
 0x29c   : > { %1569 = vmatmul.f32.vlgmr.msra.gmra.mxu2 %v2772_v27  ;;  %1623 = vmatpush.msrb.mxu0 %v1536_v24  ;;  %v1538_v21 = vand.u32 4294901760, %v1537_v51  ;;  %v1710_v22 = vand.u32 4294901760, %v1709_v19 }
 0x29d   : > { %1669 = vmatpush.msrb.mxu2 %v2767_v46 }
 0x29e   : > { %1732 = vmatpush.msra.mxu0 %v2751_v40  ;;  %1539 = vmatpush.msra.mxu1 %v1538_v21 }
 0x29f   : > { %1671 = vmatpush.msrb.mxu2 %v1670_v4  ;;  %1711 = vmatpush.msrb.mxu3 %v1710_v22 }
 0x2a0   : > { %1735 = vmatpush.msra.mxu0 %v2778_v20  ;;  %1541 = vmatmul.f32.vlgmr.msra.gmra.mxu1 %v2748_v43 }
 0x2a1   : > { %1787 = vmatpush.msra.mxu2 %v1696_v18  ;;  %1815 = vmatpush.msra.mxu3 %v2726_v55 }
 0x2a2   : > { %1643 = vmatpush.msrb.mxu1 %v2691_v31  ;;  %1738 = vmatpush.msra.mxu0 %v1707_v32 }
 0x2a3   : > { %1791 = vmatpush.msra.mxu2 %v1702_v39  ;;  %1817 = vmatpush.msra.mxu3 %v2767_v46 }
 0x2a4   : > { %1645 = vmatpush.msrb.mxu1 %v2769_v58  ;;  %1677 = vmatmul.f32.vlgmr.msrb.gmra.mxu2 %v1504_v41 }
 0x2a5   : > { %1795 = vmatpush.msra.mxu2 %v1708_v48  ;;  %1819 = vmatpush.msra.mxu3 %v1670_v4 }
 0x2a6   : > { %1647 = vmatpush.msrb.mxu1 %v1498_v25  ;;  %1625 = vmatmul.f32.vlgmr.msrb.gmra.mxu0 %v2748_v43 }
 0x2a7   : > { %1713 = vmatmul.f32.vlgmr.msrb.gmra.mxu3 %v2748_v43 }
 0x2a8   : > { %1759 = vmatpush.msra.mxu1 %v2726_v55 }
 0x2a9   : > { %1649 = vmatmul.f32.vlgmr.msrb.gmra.mxu1 %v2748_v43 }
 0x2aa   : > { %1761 = vmatpush.msra.mxu1 %v2767_v46 }
 0x2ac   : > { %1763 = vmatpush.msra.mxu1 %v1670_v4  ;;  %1797 = vmatmul.f32.vlgmr.msra.gmra.mxu2 %v2748_v43 }
 0x2ae   : > { %1741 = vmatmul.f32.vlgmr.msra.gmra.mxu0 %v2772_v27 }
 0x2af   : > { %1821 = vmatmul.f32.vlgmr.msra.gmra.mxu3 %v2748_v43 }
 0x2b1   : > { %1767 = vmatmul.f32.vlgmr.msra.gmra.mxu1 %v2794_v13 }
 0x314   : > { %v1506_v31 = vpop.f32.mrf.mxu0 }
 0x31c   : > { %v1596_v56 = vpop.f32.mrf.mxu3 }
 0x31d   : > { %v1542_v49 = vpop.f32.mrf.mxu1 }
 0x31e   : > { %v1543_v14 = vadd.f32 %v1542_v49, %v1506_v31 }
 0x31f   : > { %v1570_v40 = vpop.f32.mrf.mxu2 }
 0x320   : > { %v1571_v9 = vadd.f32 %v1570_v40, %v1543_v14 }
 0x322   : > { %v1597_v61 = vadd.f32 %v1596_v56, %v1571_v9 }
 0x323   : > { %v1626_v2 = vpop.f32.mrf.mxu0 }
 0x324   : > { %v1627_v43 = vadd.f32 %v1626_v2, %v1597_v61 }
 0x326   : > { %v1650_v55 = vpop.f32.mrf.mxu1 }
 0x327   : > { %v1678_v16 = vpop.f32.mrf.mxu2  ;;  %v1651_v60 = vadd.f32 %v1650_v55, %v1627_v43 }
 0x329   : > { %v1825_v28 = vmax.f32 %v1651_v60, 0.0 }
 0x32a   : > { %v1714_v52 = vpop.f32.mrf.mxu3 }
 0x32b   : > { %v1715_v59 = vadd.f32 %v1714_v52, %v1678_v16  ;;  %v1742_v35 = vpop.f32.mrf.mxu0 }
 0x32d   : > { %v1743_v44 = vadd.f32 %v1742_v35, %v1715_v59 }
 0x32e   : > { %v1768_v57 = vpop.f32.mrf.mxu1 }
 0x32f   : > { %v1798_v46 = vpop.f32.mrf.mxu2  ;;  %v1769_v58 = vadd.f32 %v1768_v57, %v1743_v44 }
 0x331   : > { %v1799_v27 = vadd.f32 %v1798_v46, %v1769_v58 }
 0x332   : > { %v1822_v45 = vpop.f32.mrf.mxu3 }
 0x333   : > { %v1823_v47 = vadd.f32 %v1822_v45, %v1799_v27 }
 0x335   : > { %v1826_v54 = vmax.f32 %v1823_v47, 0.0 }
 0x337   : > { %v1829_v18 = vrot.slane %v1826_v54, 4 }
 0x339   : > { %v1830_v26 = vsel %vm934_vm3, %v1825_v28, %v1829_v18 }
 0x33a   : > { %1832 = vst [vmem:[%s268_s25] sm:$0xff] %v1830_v26 }
 0x33b PF: > { %s16_s21 = sadd.s32 1, %s1943_s21  }
 0x33c   : > { %p13_p4 = scmp.ge.s32.totalorder %s16_s21, 4  }
 0x33e   :  { %15 = sbr.rel (!%p13_p4) target bundleno = 1 (0x1), region = 84 }

</bundles_post_ra>
